<compile_context>
chip_gen: v5e
topology: v5e:2x2
jax: 0.10.0
libtpu: 0.0.40
codegen_flags: <defaults>
</compile_context>

<pallas_src>
import jax
import jax.numpy as jnp
from jax.experimental import pallas as pl
from jax.experimental.pallas import tpu as pltpu


_MXU_CHANNEL_THRESHOLD = 16  # use the MXU only when the contraction is deep enough


def outconv_kernel(x_ref, w_ref, b_ref, o_ref):
    # x_ref: (1, C_in, T)   spatial tile, lane-dense (T is the lane axis)
    # w_ref: (C_out, C_in)
    # b_ref: (C_out, 1)
    # o_ref: (1, C_out, T)
    x = x_ref[0]                                # (C_in, T)
    w = w_ref[...]                              # (C_out, C_in)
    c_out, c_in = w.shape
    b = b_ref[...].astype(jnp.float32)          # (C_out, 1)

    if c_in >= _MXU_CHANNEL_THRESHOLD:
        # Deep enough contraction: use the MXU, add bias on the result.
        acc = jax.lax.dot_general(
            w, x,
            dimension_numbers=(((1,), (0,)), ((), ())),
            preferred_element_type=jnp.float32) + b
    else:
        # Tiny channel mix: unrolled VPU FMA chain, f32 accumulate, with the
        # bias folded into the accumulator init (saves one (C_out, T) pass).
        xf = x.astype(jnp.float32)
        wf = w.astype(jnp.float32)
        acc = wf[:, 0:1] * xf[0:1, :] + b       # (C_out, T)
        for ci in range(1, c_in):
            acc = acc + wf[:, ci:ci + 1] * xf[ci:ci + 1, :]

    o_ref[0] = acc.astype(o_ref.dtype)


def _round_up(x, m):
    return ((x + m - 1) // m) * m


def _vmem_plan():
    """Per-generation (tile budget, scoped VMEM limit) in bytes."""
    try:
        cap = int(getattr(pltpu.get_tpu_info(), "vmem_capacity_bytes", 64 << 20))
    except Exception:
        cap = 64 << 20  # conservative: assume v7x-sized VMEM
    if cap >= (128 << 20):
        # v5e / v6e: 128 MiB physical VMEM -> bigger tiles, raised scoped limit.
        return 24 << 20, 40 << 20
    # v7x: 64 MiB physical VMEM.
    return 16 << 20, 32 << 20


def _largest_dividing_tile(hw, t_max):
    """Largest 128-multiple that divides hw and is <= t_max (0 if none)."""
    if hw % 128 != 0:
        return 0
    m = hw // 128
    limit = min(m, t_max // 128)
    for d in range(limit, 0, -1):
        if m % d == 0:
            return d * 128
    return 0


def _spatial_tile(hw, c_in, c_out, n, budget_bytes):
    """Pick a lane-dense spatial tile size.

    Per grid step we hold a (C_in, T) input tile and a (C_out, T) output tile,
    each double-buffered, in f32 (sublanes pad to 8).
    """
    bytes_per_col = 4 * 2 * (_round_up(c_in, 8) + _round_up(c_out, 8))
    t = max(128, (budget_bytes // bytes_per_col) // 128 * 128)
    if c_in >= _MXU_CHANNEL_THRESHOLD:
        # Align the streamed dimension to the MXU width on v6e/v7x.
        t = max(256, (t // 256) * 256)
    if n == 1:
        # Guarantee >= 2 spatial grid steps so both v7x TCs get work.
        t = max(128, min(t, _round_up(pl.cdiv(hw, 2), 128)))
    if hw <= t:
        # Single full-extent block (block == full dim, (8,128) rule N/A).
        return hw
    # Prefer a T that divides HW (avoids a nearly-empty ragged last step),
    # but only if it doesn't shrink the tile by more than 2x.
    d = _largest_dividing_tile(hw, t)
    if d >= max(128, t // 2):
        return d
    return t


@jax.jit
def out_conv(x_nchw, weight, bias):
    """1x1 Conv2d forward.

    x_nchw: (N, C_in, H, W) float32
    weight: (C_out, C_in, 1, 1) float32   (PyTorch Conv2d layout)
    bias:   (C_out,) float32
    returns (N, C_out, H, W) float32
    """
    N, C_in, H, W = x_nchw.shape
    C_out = weight.shape[0]
    HW = H * W

    # Free reshapes (no transpose / data movement): channels stay on the
    # sublane axis, spatial (large) lands on the lane axis.
    x3 = x_nchw.reshape(N, C_in, HW)          # (N, C_in, HW)
    w = weight.reshape(C_out, C_in)           # (C_out, C_in)
    b = bias.reshape(C_out, 1)                # (C_out, 1)

    budget_bytes, vmem_limit_bytes = _vmem_plan()
    T = _spatial_tile(HW, C_in, C_out, N, budget_bytes)
    grid = (N, pl.cdiv(HW, T))                # ragged last tile masked by Pallas

    cost = pl.CostEstimate(
        flops=2 * N * HW * C_in * C_out,
        transcendentals=0,
        bytes_accessed=4 * (N * C_in * HW + C_out * C_in + C_out + N * C_out * HW),
    )

    out3 = pl.pallas_call(
        outconv_kernel,
        out_shape=jax.ShapeDtypeStruct((N, C_out, HW), x_nchw.dtype),
        grid=grid,
        in_specs=[
            # x: one image, full channel extent, one spatial tile.
            pl.BlockSpec((1, C_in, T), lambda n, s: (n, 0, s)),
            # weight / bias: tiny, fully resident, grid-invariant.
            pl.BlockSpec((C_out, C_in), lambda n, s: (0, 0)),
            pl.BlockSpec((C_out, 1), lambda n, s: (0, 0)),
        ],
        out_specs=pl.BlockSpec((1, C_out, T), lambda n, s: (n, 0, s)),
        compiler_params=pltpu.CompilerParams(
            # Both grid axes are independent -> shardable across v7x's 2 TCs.
            dimension_semantics=("parallel", "parallel"),
            vmem_limit_bytes=vmem_limit_bytes),
        cost_estimate=cost,
    )(x3, w, b)

    return out3.reshape(N, C_out, H, W)


if __name__ == "__main__":
    key = jax.random.PRNGKey(0)
    k_x, k_w, k_b = jax.random.split(key, 3)

    N, C_in, C_out, H, Wd = 2, 4, 3, 16, 16

    x = jax.random.normal(k_x, (N, C_in, H, Wd), dtype=jnp.float32)
    # PyTorch-style uniform init bounds for Conv2d(in=4, out=3, k=1).
    bound = 1.0 / (C_in ** 0.5)
    weight = jax.random.uniform(k_w, (C_out, C_in, 1, 1),
                                minval=-bound, maxval=bound, dtype=jnp.float32)
    bias = jax.random.uniform(k_b, (C_out,),
                              minval=-bound, maxval=bound, dtype=jnp.float32)

    out = out_conv(x, weight, bias)
    out = jax.block_until_ready(out)

    # Reference in plain JAX.
    ref = jnp.einsum("nchw,oc->nohw", x, weight.reshape(C_out, C_in)) \
          + bias.reshape(1, C_out, 1, 1)
    assert out.shape == (N, C_out, H, Wd)
    assert jnp.allclose(out, ref, atol=1e-5, rtol=1e-5)

    print("KERNEL_OK")
</pallas_src>

<mosaic_0001>
module attributes {stable_mosaic.version = 11 : i64} {
  func.func @outconv_kernel(%arg0: i32, %arg1: i32, %arg2: memref<1x4x256xf32, #tpu.memory_space<vmem>>, %arg3: memref<3x4xf32, #tpu.memory_space<vmem>>, %arg4: memref<3x1xf32, #tpu.memory_space<vmem>>, %arg5: memref<1x3x256xf32, #tpu.memory_space<vmem>>) attributes {dimension_semantics = [#tpu.dimension_semantics<parallel>, #tpu.dimension_semantics<parallel>], iteration_bounds = array<i64: 2, 1>, scalar_prefetch = 0 : i64, scratch_operands = 0 : i64, tpu.core_type = #tpu.core_type<tc>, window_params = [{transform_indices = @transform_0, window_bounds = array<i64: 1, 4, 256>}, {pipeline_mode = #tpu.pipeline_mode<synchronous>, transform_indices = @transform_1, window_bounds = array<i64: 3, 4>}, {pipeline_mode = #tpu.pipeline_mode<synchronous>, transform_indices = @transform_2, window_bounds = array<i64: 3, 1>}, {transform_indices = @transform_3, window_bounds = array<i64: 1, 3, 256>}]} {
    %c0 = arith.constant 0 : index
    %c0_0 = arith.constant 0 : index
    %c0_1 = arith.constant 0 : index
    %0 = vector.load %arg2[%c0, %c0_0, %c0_1] : memref<1x4x256xf32, #tpu.memory_space<vmem>>, vector<1x4x256xf32>
    %1 = vector.shape_cast %0 : vector<1x4x256xf32> to vector<4x256xf32>
    %c0_2 = arith.constant 0 : index
    %c0_3 = arith.constant 0 : index
    %2 = vector.load %arg3[%c0_2, %c0_3] : memref<3x4xf32, #tpu.memory_space<vmem>>, vector<3x4xf32>
    %c0_4 = arith.constant 0 : index
    %c0_5 = arith.constant 0 : index
    %3 = vector.load %arg4[%c0_4, %c0_5] : memref<3x1xf32, #tpu.memory_space<vmem>>, vector<3x1xf32>
    %4 = vector.extract_strided_slice %2 {offsets = [0, 0], sizes = [3, 1], strides = [1, 1]} : vector<3x4xf32> to vector<3x1xf32>
    %5 = vector.extract_strided_slice %1 {offsets = [0, 0], sizes = [1, 256], strides = [1, 1]} : vector<4x256xf32> to vector<1x256xf32>
    %6 = vector.broadcast %4 : vector<3x1xf32> to vector<3x256xf32>
    %7 = vector.broadcast %5 : vector<1x256xf32> to vector<3x256xf32>
    %8 = arith.mulf %6, %7 : vector<3x256xf32>
    %9 = vector.broadcast %3 : vector<3x1xf32> to vector<3x256xf32>
    %10 = arith.addf %8, %9 : vector<3x256xf32>
    %11 = vector.extract_strided_slice %2 {offsets = [0, 1], sizes = [3, 1], strides = [1, 1]} : vector<3x4xf32> to vector<3x1xf32>
    %12 = vector.extract_strided_slice %1 {offsets = [1, 0], sizes = [1, 256], strides = [1, 1]} : vector<4x256xf32> to vector<1x256xf32>
    %13 = vector.broadcast %11 : vector<3x1xf32> to vector<3x256xf32>
    %14 = vector.broadcast %12 : vector<1x256xf32> to vector<3x256xf32>
    %15 = arith.mulf %13, %14 : vector<3x256xf32>
    %16 = arith.addf %10, %15 : vector<3x256xf32>
    %17 = vector.extract_strided_slice %2 {offsets = [0, 2], sizes = [3, 1], strides = [1, 1]} : vector<3x4xf32> to vector<3x1xf32>
    %18 = vector.extract_strided_slice %1 {offsets = [2, 0], sizes = [1, 256], strides = [1, 1]} : vector<4x256xf32> to vector<1x256xf32>
    %19 = vector.broadcast %17 : vector<3x1xf32> to vector<3x256xf32>
    %20 = vector.broadcast %18 : vector<1x256xf32> to vector<3x256xf32>
    %21 = arith.mulf %19, %20 : vector<3x256xf32>
    %22 = arith.addf %16, %21 : vector<3x256xf32>
    %23 = vector.extract_strided_slice %2 {offsets = [0, 3], sizes = [3, 1], strides = [1, 1]} : vector<3x4xf32> to vector<3x1xf32>
    %24 = vector.extract_strided_slice %1 {offsets = [3, 0], sizes = [1, 256], strides = [1, 1]} : vector<4x256xf32> to vector<1x256xf32>
    %25 = vector.broadcast %23 : vector<3x1xf32> to vector<3x256xf32>
    %26 = vector.broadcast %24 : vector<1x256xf32> to vector<3x256xf32>
    %27 = arith.mulf %25, %26 : vector<3x256xf32>
    %28 = arith.addf %22, %27 : vector<3x256xf32>
    %c0_6 = arith.constant 0 : index
    %c0_7 = arith.constant 0 : index
    %c0_8 = arith.constant 0 : index
    %29 = vector.load %arg5[%c0_6, %c0_7, %c0_8] : memref<1x3x256xf32, #tpu.memory_space<vmem>>, vector<1x3x256xf32>
    %30 = vector.shape_cast %29 : vector<1x3x256xf32> to vector<3x256xf32>
    %31 = vector.shape_cast %28 : vector<3x256xf32> to vector<1x3x256xf32>
    tpu.vector_store %arg5[%c0_6, %c0_7, %c0_8], %31 {strides = array<i32>} : memref<1x3x256xf32, #tpu.memory_space<vmem>>, vector<1x3x256xf32>,
    return
  }
  func.func @transform_0(%arg0: i32, %arg1: i32) -> (i32, i32, i32) {
    %c0_i32 = arith.constant 0 : i32
    %c0_i32_0 = arith.constant 0 : i32
    return %arg0, %c0_i32, %arg1 : i32, i32, i32
  }
  func.func @transform_1(%arg0: i32, %arg1: i32) -> (i32, i32) {
    %c0_i32 = arith.constant 0 : i32
    %c0_i32_0 = arith.constant 0 : i32
    %c0_i32_1 = arith.constant 0 : i32
    return %c0_i32, %c0_i32_0 : i32, i32
  }
  func.func @transform_2(%arg0: i32, %arg1: i32) -> (i32, i32) {
    %c0_i32 = arith.constant 0 : i32
    %c0_i32_0 = arith.constant 0 : i32
    %c0_i32_1 = arith.constant 0 : i32
    return %c0_i32, %c0_i32_0 : i32, i32
  }
  func.func @transform_3(%arg0: i32, %arg1: i32) -> (i32, i32, i32) {
    %c0_i32 = arith.constant 0 : i32
    %c0_i32_0 = arith.constant 0 : i32
    return %arg0, %c0_i32, %arg1 : i32, i32, i32
  }
}

</mosaic_0001>

<bundles_post_ra>
// kernel: out_conv.1
= control target key start
LH: loop header
LB: loop body
LE: loop exit
PB: predicated region body
PF: predicated region fallthrough
CT: control target
= control target key end

     0   :  { %s464_s12 = smov 0   ;;  %s466_s13 = smov 0   ;;  %s510_s0 = inlined_call_operand.vmem [shape: f32[2,4,256], index: 0, kind: input, shape index: {}]   ;;  %s511_s1 = inlined_call_operand.vmem [shape: f32[3,4], index: 1, kind: input, shape index: {}]   ;;  %s512_s2 = inlined_call_operand.vmem [shape: f32[3,1], index: 2, kind: input, shape index: {}]   ;;  %s513_s3 = inlined_call_operand.vmem [shape: f32[2,3,256], index: 3, kind: output, shape index: {}]  }
   0x1   :  { %s468_s14 = smov 0  }
   0x2 LB: > { %s25_s15 = sadd.s32 1, %s434_s13  ;;  %p374_p0 = scmp.ge.s32.totalorder %s438_s14, 1  ;;  %s438_s14 = sphi %s468_s14, %s13_s14   ;;  %s434_s13 = sphi %s466_s13, %s515_s13   ;;  %s430_s12 = sphi %s464_s12, %s514_s12  }
   0x3   : > { %p27_p1 = scmp.ge.s32.totalorder %s25_s15, 2  ;;  %p158_p2 = scmp.lt.s32.totalorder %s438_s14, 3 }
   0x5   : > { %s517_s15 = smov (%p27_p1, %s25_s15), 0  ;;  %p159_p3 = pnand %p374_p0, %p158_p2 }
   0x6   : > { %p191_p4 = scmp.lt.s32.totalorder (!%p159_p3), %s430_s12, 1 }
   0x7   : > { %162 = sbr.rel (%p159_p3) target bundleno = 149 (0x95), region = 32 }
   0xc   : > { %v211_v0 = vld [vmem:[%s511_s1] sm:$0x7]  ;;  %v440_v1 = vmov 0   ;;  %v441_v2 = vmov 1   ;;  %v442_v3 = vmov 3   ;;  %v443_v5 = vmov 2  }
   0xd   : > { %411 = vset.pattern.permute.xlu0 %v440_v1  ;;  %412 = vset.pattern.permute.xlu1 %v441_v2  ;;  %v212_v4 = vld [vmem:[%s512_s2] sm:$0x7]  ;;  %s519_s12 = smov (!%p191_p4, %s430_s12), 1  ;;  %vm279_vm0 = vcmask 1043456  }
   0xe   : > { %215 = vperm.xlu0 %411, %v211_v0   ;;  %235 = vperm.xlu1 %412, %v211_v0   ;;  %s381_s20 = sshll.u32 %s519_s12, 3 }
   0xf   : > { %414 = vset.pattern.permute.xlu2 %v442_v3  ;;  %s198_s23 = scalar_lea.vmem %s510_s0, %s381_s20  ;;  %s208_s26 = scalar_lea.vmem %s513_s3, %s381_s20 }
  0x10   : > { %263 = vperm.xlu2 %414, %v211_v0   ;;  %v210_v6 = vld [vmem:[%s198_s23] sm:$0xff] }
  0x11   : > { %v219_v7 = vperm.slane %v210_v6, 0  ;;  %v220_v8 = vperm.slane %v210_v6, 4  ;;  %v238_v11 = vperm.slane %v210_v6, 1  ;;  %v239_v12 = vperm.slane %v210_v6, 5 }
  0x12   : > { %v252_v13 = vperm.slane %v210_v6, 2  ;;  %v253_v14 = vperm.slane %v210_v6, 6  ;;  %v267_v17 = vperm.slane %v210_v6, 7  ;;  %v266_v18 = vperm.slane %v210_v6, 3 }
  0x13   : > { %v223_v15 = vperm.slane %v219_v7, 0  ;;  %v224_v16 = vperm.slane %v220_v8, 0  ;;  %v242_v19 = vperm.slane %v238_v11, 1  ;;  %v243_v20 = vperm.slane %v239_v12, 1 }
  0x14   : > { %v256_v21 = vperm.slane %v252_v13, 2  ;;  %v257_v22 = vperm.slane %v253_v14, 2  ;;  %v271_v25 = vperm.slane %v267_v17, 3  ;;  %v270_v28 = vperm.slane %v266_v18, 3 }
  0x16   : > { %229 = vperm.xlu0 %411, %v212_v4   ;;  %413 = vset.pattern.permute.xlu1 %v443_v5 }
  0x17   : > { %249 = vperm.xlu1 %413, %v211_v0  }
  0x1e   : > { %415 = vset.pattern.permute.xlu0 %v442_v3 }
  0x6a   : > { %v264_v27 = vpop.permute.xlu2 %263 }
  0x6b   : > { %v273_v38 = vmul.f32 %v271_v25, %v264_v27  ;;  %v272_v41 = vmul.f32 %v270_v28, %v264_v27 }
  0x80   : > { %v216_v9 = vpop.permute.xlu0 %215  ;;  %v236_v10 = vpop.permute.xlu1 %235 }
  0x81   : > { %v225_v23 = vmul.f32 %v223_v15, %v216_v9  ;;  %v226_v24 = vmul.f32 %v224_v16, %v216_v9  ;;  %v244_v29 = vmul.f32 %v242_v19, %v236_v10  ;;  %v245_v30 = vmul.f32 %v243_v20, %v236_v10 }
  0x88   : > { %v230_v26 = vpop.permute.xlu0 %229 }
  0x89   : > { %v232_v31 = vadd.f32 %v230_v26, %v225_v23  ;;  %v233_v32 = vadd.f32 %v230_v26, %v226_v24  ;;  %v250_v33 = vpop.permute.xlu1 %249 }
  0x8a   : > { %v258_v34 = vmul.f32 %v256_v21, %v250_v33  ;;  %v259_v35 = vmul.f32 %v257_v22, %v250_v33 }
  0x8b   : > { %v246_v36 = vadd.f32 %v244_v29, %v232_v31  ;;  %v247_v37 = vadd.f32 %v245_v30, %v233_v32 }
  0x8d   : > { %v260_v39 = vadd.f32 %v258_v34, %v246_v36  ;;  %v261_v40 = vadd.f32 %v259_v35, %v247_v37 }
  0x8f   : > { %v275_v42 = vadd.f32 %v273_v38, %v261_v40  ;;  %v274_v43 = vadd.f32 %v272_v41, %v260_v39 }
  0x91   : > { %v278_v44 = vrot.slane %v275_v42, 4 }
  0x93   : > { %v280_v45 = vsel %vm279_vm0, %v274_v43, %v278_v44 }
  0x94   : > { %282 = vst [vmem:[%s208_s26] sm:$0x77] %v280_v45 }
  0x95 PF: > { %s13_s14 = sadd.s32 1, %s438_s14   ;;  %s514_s12 = smov %s434_s13 }
  0x96   : > { %p10_p5 = scmp.ge.s32.totalorder %s13_s14, 4   ;;  %s515_s13 = smov %s517_s15 }
  0x98   :  { %12 = sbr.rel (!%p10_p5) target bundleno = 2 (0x2), region = 62 }

</bundles_post_ra>
